<compile_context>
chip_gen: v5e
topology: v5e:2x2
jax: 0.10.0
libtpu: 0.0.40
codegen_flags: <defaults>
</compile_context>

<pallas_src>
import math
import functools

import jax
import jax.numpy as jnp
from jax import lax
from jax.experimental import pallas as pl
from jax.experimental.pallas import tpu as pltpu


# Large finite negative (avoids -inf - -inf = NaN). exp(_MASK_VALUE - m)
# underflows to exactly 0 for any real m.
_MASK_VALUE = -0.7 * float(jnp.finfo(jnp.float32).max)


def _last_needed_kv_block(qi, block_q, block_kv):
    """Last kv block index intersecting the causal region of q block `qi`.

    Shared by the kernel's compute-skip / finalize gates *and* the clamped
    K/V index_maps, so the conditions can never drift apart (stale tiles left
    in VMEM on skipped steps are only safe if these match exactly).
    """
    return (qi * block_q + block_q - 1) // block_kv


# --------------------------------------------------------------------------- #
# Kernel 1: fused QKV projection, head-major output (K stored transposed).
# --------------------------------------------------------------------------- #
def _qkv_proj_kernel(x_ref, w_ref, b_ref, q_ref, k_ref, v_ref,
                     *, num_heads, head_dim, compute_dtype):
    E = num_heads * head_dim
    x = x_ref[...].astype(compute_dtype)             # (TS, E)
    # Wqkv is pre-cast to compute_dtype in the wrapper: no per-step VPU cast of
    # the resident (E, 3E) tile, and half the DMA/VMEM vs f32.
    w = w_ref[...]                                    # (E, 3E) compute_dtype
    # One wide matmul instead of three; f32 accumulation; f32 bias add.
    qkv = jnp.dot(x, w, preferred_element_type=jnp.float32) + b_ref[...]   # (TS, 3E)
    ts = x.shape[0]

    def head_major(i):                                # (TS,E) -> (H, TS, Dh)
        h = qkv[:, i * E:(i + 1) * E]
        return h.reshape(ts, num_heads, head_dim).transpose(1, 0, 2)

    q_ref[...] = head_major(0).astype(q_ref.dtype)
    # K stored transposed, (H, Dh, TS): lane-dense store along S (unmasked vst
    # for S >= 128) and removes the RHS transpose from kernel 2's QK^T matmul.
    k_ref[...] = jnp.swapaxes(head_major(1), 1, 2).astype(k_ref.dtype)
    v_ref[...] = head_major(2).astype(v_ref.dtype)


# --------------------------------------------------------------------------- #
# Kernel 2: block-causal flash attention + fused output projection.
# --------------------------------------------------------------------------- #
def _flash_attn_kernel(q_ref, kt_ref, v_ref, wo_ref, bo_ref, o_ref,
                       m_scr, l_scr, acc_scr,
                       *, num_heads, head_dim, block_q, block_kv,
                       compute_dtype, exp_dtype, approx_recip):
    qi = pl.program_id(1)
    ki = pl.program_id(2)

    last_needed = _last_needed_kv_block(qi, block_q, block_kv)
    # Fully-visible block (strictly below the diagonal): no mask required.
    fully_visible = ki * block_kv + block_kv - 1 <= qi * block_q
    # Diagonal-straddling block: intersects the causal region, needs the mask.
    straddles = jnp.logical_and(ki <= last_needed, jnp.logical_not(fully_visible))

    @pl.when(ki == 0)
    def _init():
        m_scr[...] = jnp.full_like(m_scr, _MASK_VALUE)
        l_scr[...] = jnp.zeros_like(l_scr)
        acc_scr[...] = jnp.zeros_like(acc_scr)

    def scores():
        # q: (H, TQ, Dh); kt: (H, Dh, TKV).  1/sqrt(Dh) is folded into Wq in the
        # wrapper, so there is no per-step score scaling here.
        return jnp.einsum("hqd,hdk->hqk", q_ref[...], kt_ref[...],
                          preferred_element_type=jnp.float32)

    def online_softmax_update(s):
        # All m/l bookkeeping in f32; only the big exp may run in exp_dtype.
        m_prev = m_scr[...]                           # (H, TQ, 1) f32
        m_new = jnp.maximum(m_prev, jnp.max(s, axis=-1, keepdims=True))
        alpha = jnp.exp(m_prev - m_new)               # (H, TQ, 1) f32
        p = jnp.exp((s - m_new).astype(exp_dtype))    # (H, TQ, TKV)
        l_scr[...] = alpha * l_scr[...] + jnp.sum(
            p, axis=-1, keepdims=True, dtype=jnp.float32)
        acc_scr[...] = alpha * acc_scr[...] + jnp.einsum(
            "hqk,hkd->hqd", p.astype(compute_dtype), v_ref[...],
            preferred_element_type=jnp.float32)
        m_scr[...] = m_new

    @pl.when(fully_visible)
    def _compute_unmasked():
        online_softmax_update(scores())

    @pl.when(straddles)
    def _compute_masked():
        s = scores()
        row = qi * block_q + lax.broadcasted_iota(jnp.int32, (block_q, block_kv), 0)
        col = ki * block_kv + lax.broadcasted_iota(jnp.int32, (block_q, block_kv), 1)
        # NOTE: kv block 0 is always processed first and contains an unmasked
        # column for every row, so m is real before any fully-masked row could
        # appear; exp(_MASK_VALUE - m) then underflows to exactly 0 and never
        # corrupts l/acc.  Do not change the kv iteration start without also
        # masking p here.
        s = jnp.where((col <= row)[None, :, :], s, _MASK_VALUE)
        online_softmax_update(s)

    # Early finalize: fire at the last *needed* kv block (not the last grid
    # step) so the epilogue hides under the dead above-diagonal steps.
    @pl.when(ki == last_needed)
    def _finalize():
        if approx_recip:
            inv_l = pl.reciprocal(l_scr[...], approx=True)   # EUP slot
        else:
            inv_l = 1.0 / l_scr[...]                         # exact (strict f32 path)
        # Cast before the XLU transpose to halve its width on the bf16 path.
        attn = (acc_scr[...] * inv_l).astype(compute_dtype)  # (H, TQ, Dh)
        attn = attn.transpose(1, 0, 2).reshape(block_q, num_heads * head_dim)
        out = jnp.dot(attn, wo_ref[...],
                      preferred_element_type=jnp.float32) + bo_ref[...]
        o_ref[...] = out.astype(o_ref.dtype)


# --------------------------------------------------------------------------- #
# Wrapper.
# --------------------------------------------------------------------------- #
def causal_attention(x, params, *, num_heads,
                     block_q=None, block_kv=None, block_s=None,
                     compute_dtype=jnp.bfloat16, exp_dtype=None,
                     vmem_limit_bytes=64 * 1024 * 1024):
    """x: (B, S, E).  params: wq/wk/wv/wo (E,E) and bq/bk/bv/bo (1,E), f32."""
    B, S, E = x.shape
    assert E % num_heads == 0, "embed_dim must be divisible by num_heads."
    Dh = E // num_heads

    # Default tiles: 256x256 fits v7x's 64 MiB VMEM with headroom and still
    # fills the 256-wide MXU; sweep per generation (keep multiples of 128).
    block_q = min(block_q or 256, S)
    block_kv = min(block_kv or 256, S)
    block_s = min(block_s or 256, S)
    assert S % block_q == 0 and S % block_kv == 0 and S % block_s == 0

    if exp_dtype is None:
        exp_dtype = jnp.float32    # bf16 exp profitable only on v6e/v7x (bf16 EUP).
    approx_recip = compute_dtype != jnp.float32

    # Fold 1/sqrt(Dh) into the Q projection (removes per-kv-step VPU scaling).
    scale = 1.0 / math.sqrt(Dh)
    wq = params["wq"] * scale
    bq = params["bq"] * scale
    # Pre-cast weights to compute_dtype; biases stay f32 (negligible size, add
    # straight onto the f32 accumulators).
    wqkv = jnp.concatenate([wq, params["wk"], params["wv"]], axis=1).astype(compute_dtype)
    bqkv = jnp.concatenate([bq, params["bk"], params["bv"]], axis=1)      # (1, 3E) f32
    wo = params["wo"].astype(compute_dtype)
    bo = params["bo"]                                                      # (1, E) f32

    # ---------------- Kernel 1: fused QKV projection ---------------- #
    qkv_kernel = functools.partial(
        _qkv_proj_kernel, num_heads=num_heads, head_dim=Dh,
        compute_dtype=compute_dtype)

    # TODO(synk): for E >= ~2048 add an output-column tile axis
    #             (grid=(B, S//block_s, 3E//block_n)) so Wqkv streams; on v7x
    #             also single-buffer the constant-index weight specs
    #             (pipeline_mode=pl.Buffered(1)).
    q, k_t, v = pl.pallas_call(
        qkv_kernel,
        out_shape=(
            jax.ShapeDtypeStruct((B, num_heads, S, Dh), compute_dtype),   # Q
            jax.ShapeDtypeStruct((B, num_heads, Dh, S), compute_dtype),   # K^T
            jax.ShapeDtypeStruct((B, num_heads, S, Dh), compute_dtype),   # V
        ),
        grid_spec=pltpu.PrefetchScalarGridSpec(
            num_scalar_prefetch=0,
            grid=(B, S // block_s),
            in_specs=[
                pl.BlockSpec((None, block_s, E), lambda b, si: (b, si, 0)),   # x
                pl.BlockSpec((E, 3 * E), lambda b, si: (0, 0)),               # Wqkv
                pl.BlockSpec((1, 3 * E), lambda b, si: (0, 0)),               # bqkv
            ],
            out_specs=[
                pl.BlockSpec((None, num_heads, block_s, Dh), lambda b, si: (b, 0, si, 0)),
                pl.BlockSpec((None, num_heads, Dh, block_s), lambda b, si: (b, 0, 0, si)),
                pl.BlockSpec((None, num_heads, block_s, Dh), lambda b, si: (b, 0, si, 0)),
            ],
        ),
        compiler_params=pltpu.CompilerParams(
            dimension_semantics=("parallel", "parallel"),
            vmem_limit_bytes=vmem_limit_bytes),
    )(x, wqkv, bqkv)

    # ------- Kernel 2: flash attention + fused output projection ------- #
    def q_index_map(b, qi, ki):
        return (b, 0, qi, 0)

    def kt_index_map(b, qi, ki):
        # Clamp to the last causally-needed kv block: skipped (above-diagonal)
        # steps repeat the previous block index so no DMA is issued for them.
        return (b, 0, 0, jnp.minimum(ki, _last_needed_kv_block(qi, block_q, block_kv)))

    def v_index_map(b, qi, ki):
        return (b, 0, jnp.minimum(ki, _last_needed_kv_block(qi, block_q, block_kv)), 0)

    attn_kernel = functools.partial(
        _flash_attn_kernel, num_heads=num_heads, head_dim=Dh,
        block_q=block_q, block_kv=block_kv,
        compute_dtype=compute_dtype, exp_dtype=exp_dtype,
        approx_recip=approx_recip)

    # TODO(synk): v7x megacore — interleave q blocks across the 2 TensorCores
    #             (or split on batch) to balance causal work; for long S pull
    #             the kv loop in-kernel to remove the dead grid steps entirely.
    out = pl.pallas_call(
        attn_kernel,
        out_shape=jax.ShapeDtypeStruct((B, S, E), x.dtype),
        grid_spec=pltpu.PrefetchScalarGridSpec(
            num_scalar_prefetch=0,
            grid=(B, S // block_q, S // block_kv),
            in_specs=[
                pl.BlockSpec((None, num_heads, block_q, Dh), q_index_map),    # Q
                pl.BlockSpec((None, num_heads, Dh, block_kv), kt_index_map),  # K^T
                pl.BlockSpec((None, num_heads, block_kv, Dh), v_index_map),   # V
                pl.BlockSpec((E, E), lambda b, qi, ki: (0, 0)),               # Wo
                pl.BlockSpec((1, E), lambda b, qi, ki: (0, 0)),               # bo
            ],
            out_specs=pl.BlockSpec((None, block_q, E), lambda b, qi, ki: (b, qi, 0)),
            scratch_shapes=[
                pltpu.VMEM((num_heads, block_q, 1), jnp.float32),    # running max
                pltpu.VMEM((num_heads, block_q, 1), jnp.float32),    # running sum
                pltpu.VMEM((num_heads, block_q, Dh), jnp.float32),   # accumulator
            ],
        ),
        compiler_params=pltpu.CompilerParams(
            dimension_semantics=("parallel", "parallel", "arbitrary"),
            vmem_limit_bytes=vmem_limit_bytes),
    )(q, k_t, v, wo, bo)
    return out


# --------------------------------------------------------------------------- #
# Pure-JAX reference mirroring the PyTorch forward (eval mode).
# --------------------------------------------------------------------------- #
def _reference(x, params, *, num_heads):
    B, S, E = x.shape
    Dh = E // num_heads

    def proj(w, b):
        return x @ w + b[0]

    q = proj(params["wq"], params["bq"]).reshape(B, S, num_heads, Dh).transpose(0, 2, 1, 3)
    k = proj(params["wk"], params["bk"]).reshape(B, S, num_heads, Dh).transpose(0, 2, 1, 3)
    v = proj(params["wv"], params["bv"]).reshape(B, S, num_heads, Dh).transpose(0, 2, 1, 3)

    scores = jnp.einsum("bhqd,bhkd->bhqk", q, k) / math.sqrt(Dh)
    mask = jnp.tril(jnp.ones((S, S), dtype=bool))
    scores = jnp.where(mask[None, None], scores, -jnp.inf)
    probs = jax.nn.softmax(scores, axis=-1)
    out = jnp.einsum("bhqk,bhkd->bhqd", probs, v)
    out = out.transpose(0, 2, 1, 3).reshape(B, S, E)
    return out @ params["wo"] + params["bo"][0]


def init_params(key, embed_dim):
    """Deterministic init mimicking nn.Linear's U(-1/sqrt(in), 1/sqrt(in))."""
    bound = 1.0 / math.sqrt(embed_dim)
    names = ["wq", "bq", "wk", "bk", "wv", "bv", "wo", "bo"]
    keys = jax.random.split(key, len(names))
    params = {}
    for name, kk in zip(names, keys):
        shape = (embed_dim, embed_dim) if name.startswith("w") else (1, embed_dim)
        params[name] = jax.random.uniform(
            kk, shape, jnp.float32, minval=-bound, maxval=bound)
    return params


if __name__ == "__main__":
    # Small shapes consistent with the module: batch=2, seq=8, embed=32, heads=4.
    B, S, E, H = 2, 8, 32, 4

    key = jax.random.PRNGKey(0)
    kx, kp, kx2 = jax.random.split(key, 3)
    x = jax.random.normal(kx, (B, S, E), dtype=jnp.float32)
    params = init_params(kp, E)
    ref = _reference(x, params, num_heads=H)

    # 1) f32 compute path — strict check vs. reference.
    out = causal_attention(x, params, num_heads=H, compute_dtype=jnp.float32)
    out = jax.block_until_ready(out)
    assert out.shape == (B, S, E)
    assert jnp.allclose(out, ref, atol=2e-5, rtol=2e-5), "f32 mismatch vs reference"

    # 2) Multi-block grid (128-aligned tiles) — exercises the online softmax,
    #    block-causal skipping (clamped DMAs) and the early finalize.
    S2 = 256
    x2 = jax.random.normal(kx2, (B, S2, E), dtype=jnp.float32)
    out2 = jax.block_until_ready(
        causal_attention(x2, params, num_heads=H,
                         block_q=128, block_kv=128, block_s=128,
                         compute_dtype=jnp.float32))
    ref2 = _reference(x2, params, num_heads=H)
    assert jnp.allclose(out2, ref2, atol=2e-5, rtol=2e-5), "tiled f32 mismatch"

    # 3) bf16 MXU path (f32 accumulation) + bf16 exp + approx reciprocal.
    out_bf16 = jax.block_until_ready(
        causal_attention(x, params, num_heads=H,
                         compute_dtype=jnp.bfloat16, exp_dtype=jnp.bfloat16))
    assert jnp.allclose(out_bf16, ref, atol=1e-1, rtol=1e-1), "bf16 mismatch"

    print("KERNEL_OK")
</pallas_src>

<mosaic_0001>
module attributes {stable_mosaic.version = 11 : i64} {
  func.func @_qkv_proj_kernel(%arg0: i32, %arg1: i32, %arg2: memref<1x8x32xf32, #tpu.memory_space<vmem>>, %arg3: memref<32x96xf32, #tpu.memory_space<vmem>>, %arg4: memref<1x96xf32, #tpu.memory_space<vmem>>, %arg5: memref<1x4x8x8xf32, #tpu.memory_space<vmem>>, %arg6: memref<1x4x8x8xf32, #tpu.memory_space<vmem>>, %arg7: memref<1x4x8x8xf32, #tpu.memory_space<vmem>>) attributes {dimension_semantics = [#tpu.dimension_semantics<parallel>, #tpu.dimension_semantics<parallel>], iteration_bounds = array<i64: 2, 1>, scalar_prefetch = 0 : i64, scratch_operands = 0 : i64, tpu.core_type = #tpu.core_type<tc>, window_params = [{transform_indices = @transform_0, window_bounds = array<i64: 1, 8, 32>}, {pipeline_mode = #tpu.pipeline_mode<synchronous>, transform_indices = @transform_1, window_bounds = array<i64: 32, 96>}, {pipeline_mode = #tpu.pipeline_mode<synchronous>, transform_indices = @transform_2, window_bounds = array<i64: 1, 96>}, {transform_indices = @transform_3, window_bounds = array<i64: 1, 4, 8, 8>}, {transform_indices = @transform_4, window_bounds = array<i64: 1, 4, 8, 8>}, {transform_indices = @transform_5, window_bounds = array<i64: 1, 4, 8, 8>}]} {
    %c0 = arith.constant 0 : index
    %c0_0 = arith.constant 0 : index
    %c0_1 = arith.constant 0 : index
    %0 = vector.load %arg2[%c0, %c0_0, %c0_1] : memref<1x8x32xf32, #tpu.memory_space<vmem>>, vector<1x8x32xf32>
    %1 = vector.shape_cast %0 : vector<1x8x32xf32> to vector<8x32xf32>
    %c0_2 = arith.constant 0 : index
    %c0_3 = arith.constant 0 : index
    %2 = vector.load %arg3[%c0_2, %c0_3] : memref<32x96xf32, #tpu.memory_space<vmem>>, vector<32x96xf32>
    %cst = arith.constant dense<0.000000e+00> : vector<8x96xf32>
    %3 = tpu.matmul %1, %2, %cst {dimension_numbers = #tpu.dot_dimension_numbers<[1], [0], [0], [1], [0, 0, 1, 1], [], []>} : vector<8x32xf32>, vector<32x96xf32>, vector<8x96xf32> -> vector<8x96xf32>
    %c0_4 = arith.constant 0 : index
    %c0_5 = arith.constant 0 : index
    %4 = vector.load %arg4[%c0_4, %c0_5] : memref<1x96xf32, #tpu.memory_space<vmem>>, vector<1x96xf32>
    %5 = vector.broadcast %4 : vector<1x96xf32> to vector<8x96xf32>
    %6 = arith.addf %3, %5 : vector<8x96xf32>
    %7 = vector.extract_strided_slice %6 {offsets = [0, 0], sizes = [8, 32], strides = [1, 1]} : vector<8x96xf32> to vector<8x32xf32>
    %8 = vector.shape_cast %7 : vector<8x32xf32> to vector<8x4x8xf32>
    %9 = tpu.transpose %8, [1, 0, 2] : vector<8x4x8xf32> -> vector<4x8x8xf32>
    %c0_6 = arith.constant 0 : index
    %c0_7 = arith.constant 0 : index
    %c0_8 = arith.constant 0 : index
    %c0_9 = arith.constant 0 : index
    %10 = vector.load %arg5[%c0_6, %c0_7, %c0_8, %c0_9] : memref<1x4x8x8xf32, #tpu.memory_space<vmem>>, vector<1x4x8x8xf32>
    %11 = vector.shape_cast %10 : vector<1x4x8x8xf32> to vector<4x8x8xf32>
    %12 = vector.shape_cast %9 : vector<4x8x8xf32> to vector<1x4x8x8xf32>
    tpu.vector_store %arg5[%c0_6, %c0_7, %c0_8, %c0_9], %12 {strides = array<i32>} : memref<1x4x8x8xf32, #tpu.memory_space<vmem>>, vector<1x4x8x8xf32>,
    %13 = vector.extract_strided_slice %6 {offsets = [0, 32], sizes = [8, 32], strides = [1, 1]} : vector<8x96xf32> to vector<8x32xf32>
    %14 = vector.shape_cast %13 : vector<8x32xf32> to vector<8x4x8xf32>
    %15 = tpu.transpose %14, [1, 0, 2] : vector<8x4x8xf32> -> vector<4x8x8xf32>
    %16 = tpu.transpose %15, [0, 2, 1] : vector<4x8x8xf32> -> vector<4x8x8xf32>
    %c0_10 = arith.constant 0 : index
    %c0_11 = arith.constant 0 : index
    %c0_12 = arith.constant 0 : index
    %c0_13 = arith.constant 0 : index
    %17 = vector.load %arg6[%c0_10, %c0_11, %c0_12, %c0_13] : memref<1x4x8x8xf32, #tpu.memory_space<vmem>>, vector<1x4x8x8xf32>
    %18 = vector.shape_cast %17 : vector<1x4x8x8xf32> to vector<4x8x8xf32>
    %19 = vector.shape_cast %16 : vector<4x8x8xf32> to vector<1x4x8x8xf32>
    tpu.vector_store %arg6[%c0_10, %c0_11, %c0_12, %c0_13], %19 {strides = array<i32>} : memref<1x4x8x8xf32, #tpu.memory_space<vmem>>, vector<1x4x8x8xf32>,
    %20 = vector.extract_strided_slice %6 {offsets = [0, 64], sizes = [8, 32], strides = [1, 1]} : vector<8x96xf32> to vector<8x32xf32>
    %21 = vector.shape_cast %20 : vector<8x32xf32> to vector<8x4x8xf32>
    %22 = tpu.transpose %21, [1, 0, 2] : vector<8x4x8xf32> -> vector<4x8x8xf32>
    %c0_14 = arith.constant 0 : index
    %c0_15 = arith.constant 0 : index
    %c0_16 = arith.constant 0 : index
    %c0_17 = arith.constant 0 : index
    %23 = vector.load %arg7[%c0_14, %c0_15, %c0_16, %c0_17] : memref<1x4x8x8xf32, #tpu.memory_space<vmem>>, vector<1x4x8x8xf32>
    %24 = vector.shape_cast %23 : vector<1x4x8x8xf32> to vector<4x8x8xf32>
    %25 = vector.shape_cast %22 : vector<4x8x8xf32> to vector<1x4x8x8xf32>
    tpu.vector_store %arg7[%c0_14, %c0_15, %c0_16, %c0_17], %25 {strides = array<i32>} : memref<1x4x8x8xf32, #tpu.memory_space<vmem>>, vector<1x4x8x8xf32>,
    return
  }
  func.func @transform_0(%arg0: i32, %arg1: i32) -> (i32, i32, i32) {
    %c0_i32 = arith.constant 0 : i32
    %c0_i32_0 = arith.constant 0 : i32
    return %arg0, %arg1, %c0_i32 : i32, i32, i32
  }
  func.func @transform_1(%arg0: i32, %arg1: i32) -> (i32, i32) {
    %c0_i32 = arith.constant 0 : i32
    %c0_i32_0 = arith.constant 0 : i32
    %c0_i32_1 = arith.constant 0 : i32
    return %c0_i32, %c0_i32_0 : i32, i32
  }
  func.func @transform_2(%arg0: i32, %arg1: i32) -> (i32, i32) {
    %c0_i32 = arith.constant 0 : i32
    %c0_i32_0 = arith.constant 0 : i32
    %c0_i32_1 = arith.constant 0 : i32
    return %c0_i32, %c0_i32_0 : i32, i32
  }
  func.func @transform_3(%arg0: i32, %arg1: i32) -> (i32, i32, i32, i32) {
    %c0_i32 = arith.constant 0 : i32
    %c0_i32_0 = arith.constant 0 : i32
    %c0_i32_1 = arith.constant 0 : i32
    return %arg0, %c0_i32, %arg1, %c0_i32_0 : i32, i32, i32, i32
  }
  func.func @transform_4(%arg0: i32, %arg1: i32) -> (i32, i32, i32, i32) {
    %c0_i32 = arith.constant 0 : i32
    %c0_i32_0 = arith.constant 0 : i32
    %c0_i32_1 = arith.constant 0 : i32
    return %arg0, %c0_i32, %c0_i32_0, %arg1 : i32, i32, i32, i32
  }
  func.func @transform_5(%arg0: i32, %arg1: i32) -> (i32, i32, i32, i32) {
    %c0_i32 = arith.constant 0 : i32
    %c0_i32_0 = arith.constant 0 : i32
    %c0_i32_1 = arith.constant 0 : i32
    return %arg0, %c0_i32, %arg1, %c0_i32_0 : i32, i32, i32, i32
  }
}

</mosaic_0001>

<bundles_post_ra>
// kernel: tpu_custom_call.1
= control target key start
LH: loop header
LB: loop body
LE: loop exit
PB: predicated region body
PF: predicated region fallthrough
CT: control target
= control target key end

     0   :  { %s1800_s0 = inlined_call_operand.hbm [shape: f32[2,8,32], index: 0, kind: input, shape index: {}]   ;;  %s1801_s1 = inlined_call_operand.hbm [shape: f32[32,96], index: 1, kind: input, shape index: {}]   ;;  %s1802_s2 = inlined_call_operand.vmem [shape: f32[1,96], index: 2, kind: input, shape index: {}]   ;;  %s1803_s3 = inlined_call_operand.hbm [shape: f32[2,4,8,8], index: 3, kind: output, shape index: {0}]   ;;  %s1804_s4 = inlined_call_operand.hbm [shape: f32[2,4,8,8], index: 4, kind: output, shape index: {1}]   ;;  %s1805_s5 = inlined_call_operand.hbm [shape: f32[2,4,8,8], index: 5, kind: output, shape index: {2}]  }
   0x1   :  { %1807 = sst [smem:[#allocation15_spill]] %s1800_s0 }
   0x2   :  { %1808 = sst [smem:[#allocation16_spill]] %s1801_s1 }
   0x3   :  { %11 = vsyncpa [#allocation3], 0 }
   0x4   :  { %13 = vsyncpa [#allocation3 + $0x1], 0 }
   0x5   :  { %14 = vsyncpa [#allocation6], 0 }
   0x6   :  { %15 = vsyncpa [#allocation4], 0 }
   0x7   :  { %17 = vsyncpa [#allocation4 + $0x1], 0 }
   0x8   :  { %18 = vsyncpa [#allocation9], 0 }
   0x9   :  { %20 = vsyncpa [#allocation9 + $0x1], 0  ;;  %s1435_s18 = smov 0   ;;  %s1437_s19 = smov 0  }
   0xa   :  { %s1439_s20 = smov 0   ;;  %s1441_s21 = smov 0  }
   0xb   :  { %s1443_s22 = smov 0   ;;  %s1445_s23 = smov 0  }
   0xc LB: > { %s1466_s24 = sadd.s32 4294967295, %s1391_s23   ;;  %p1063_p0 = scmp.ge.s32.totalorder %s1391_s23, 1  ;;  %s1391_s23 = sphi %s1445_s23, %s26_s23   ;;  %s1387_s22 = sphi %s1443_s22, %s1821_s22   ;;  %s1383_s21 = sphi %s1441_s21, %s1820_s21   ;;  %s1379_s20 = sphi %s1439_s20, %s1819_s20   ;;  %s1375_s19 = sphi %s1437_s19, %s1818_s19   ;;  %s1371_s18 = sphi %s1435_s18, %s1817_s18  }
   0xd   : > { %p61_p1 = scmp.eq.s32.totalorder %s1466_s24, 0  ;;  %p197_p2 = scmp.lt.s32.totalorder %s1391_s23, 3 }
   0xe   : > { %s1809_s1 = sld [smem:[#allocation16_spill]]  ;;  %s1393_s29 = smov [#allocation5]  }
   0xf   : > { %p1474_p3 = pnand %p1063_p0, %p197_p2  ;;  %s210_s30 = sshll.u32 %s1393_s29, 4  ;;  %s211_s30 = int_to_ptr.vmem [resolvable:$true] %s210_s30 }
  0x10   : > { %p1065_p6 = scmp.ge.s32.totalorder %s1391_s23, 2  ;;  %s1394_s6 = smov 128  }
  0x11   : > { %p1101_p4 = pneg %p1474_p3  ;;  %s1395_s7 = smov 8  }
  0x12   : > { %s1806_s8 = sadd.s32 4294967294, %s1391_s23   ;;  %s38_s9 = sadd.s32 1, %s1387_s22 }
  0x13   : > { %p1102_p5 = pnand %p1101_p4, %p61_p1  ;;  %s47_s10 = sadd.s32 1, %s1379_s20 }
  0x14   : > { %s208_s27 = sshll.u32 %s1809_s1, 4  ;;  %p40_p7 = scmp.ge.s32.totalorder %s38_s9, 2  ;;  %s209_s27 = int_to_ptr.hbm [resolvable:$true] %s208_s27 }
  0x15   : > { %1104 = dma.hbm_to_vmem [thread:$0]  (!%p1102_p5), %s209_s27, 512, %s211_s30, [#allocation6], %s1394_s6, %s1394_s6, %s1395_s7  }
  0x16   : > { %p54_p8 = scmp.ne.s32.totalorder %s1379_s20, %s1375_s19  ;;  %p55_p9 = scmp.eq.s32.totalorder %s1391_s23, 0 }
  0x17   : > { %p60_p10 = scmp.ne.s32.totalorder %s1375_s19, %s1371_s18  ;;  %s1823_s9 = smov (%p40_p7, %s38_s9), 0 }
  0x18   : > { %p1493_p11 = por %p55_p9, %p54_p8  ;;  %s42_s13 = ssub.s32 %s1387_s22, %s1823_s9 }
  0x19   : > { %p1499_p12 = por %p61_p1, %p60_p10  ;;  %p128_p13 = scmp.eq.s32.totalorder %s1466_s24, 1 }
  0x1a   : > { %p45_p0 = scmp.eq.s32.totalorder %s42_s13, 0  ;;  %p134_p2 = scmp.eq.s32.totalorder %s1806_s8, 1 }
  0x1b   : > { %p1508_p4 = por %p128_p13, %p54_p8  ;;  %p1120_p5 = scmp.lt.s32.totalorder %s1391_s23, 2 }
  0x1c   : > { %s1514_s15 = scalar_select %p45_p0, %s1379_s20, %s47_s10  }
  0x1d   : > { %p1516_p7 = por %p134_p2, %p60_p10  ;;  %s227_s17 = sand.u32 1, %s1379_s20  }
  0x1e   : > { %s1066_s25 = sshll.u32 %s227_s17, 3  ;;  %s1067_s26 = sshll.u32 %s1387_s22, 3 }
  0x1f   : > { %s1815_s0 = sld [smem:[#allocation15_spill]]  ;;  %s231_s6 = scalar_lea.vmem [#allocation2], %s1066_s25 }
  0x20   : > { %s240_s7 = sshll.u32 %s231_s6, 4  ;;  %p1106_p8 = pnand %p1120_p5, %p1493_p11  ;;  %s241_s7 = int_to_ptr.vmem [resolvable:$true] %s240_s7 }
  0x21   : > { %s228_s10 = scalar_lea.sflag [#allocation3], %s227_s17  ;;  %s1530_s8 = sand.u32 (!%p1474_p3), 1, %s1375_s19  }
  0x22   : > { %s1069_s27 = sshll.u32 (!%p1474_p3), %s1530_s8, 3 }
  0x23   : > { %249 = sbr.rel (%p1474_p3) target bundleno = 620 (0x26c), region = 32  ;;  %s255_s25 = scalar_lea.vmem (!%p1474_p3), [#allocation2], %s1069_s27 }
  0x25   : > { %s236_s30 = scalar_lea.hbm %s1815_s0, %s1067_s26  ;;  %s252_s26 = scalar_lea.sflag (!%p1474_p3), [#allocation3], %s1530_s8 }
  0x26   : > { %s238_s13 = sshll.u32 %s236_s30, 4  ;;  %s239_s13 = int_to_ptr.hbm [resolvable:$true] %s238_s13 }
  0x27   : > { %1108 = dma.hbm_to_vmem [thread:$0]  (!%p1106_p8), %s239_s13, 128, %s241_s7, %s228_s10  }
  0x28   : > { %1354 = dma.done.wait (%p1499_p12), %s252_s26, 128  }
  0x29   : > { %1356 = vsyncadd (%p1499_p12), %s252_s26, 4294967168 }
  0x2a   : > { %1358 = dma.done.wait (%p61_p1), [#allocation6], 512  }
  0x2b   : > { %1360 = vsyncadd (%p61_p1), [#allocation6], 4294966784  ;;  %v302_v0 = vld [vmem:[#allocation5 + $0x18] sm:$0xff]  ;;  %v301_v1 = vld [vmem:[#allocation5 + $0x10] sm:$0xff]  ;;  %vm307_vm0 = vcmask 261120   ;;  %s1396_s12 = smov 104  }
  0x2c   : > { %323 = vmatpush.msra.mxu0 %v302_v0  ;;  %v300_v2 = vld [vmem:[#allocation5 + $0x8] sm:$0xff]  ;;  %v299_v3 = vld [vmem:[#allocation5] sm:$0xff]  ;;  %v298_v4 = vld [vmem:[%s255_s25] sm:$0xff]  ;;  %s1397_s17 = smov 112   ;;  %s1398_s29 = smov 96   ;;  %vm342_vm1 = vcmask 1047556  }
  0x2d   : > { %v1184_v5 = vld [vmem:[%s1802_s2] ss:$0 sm:$0xff]  ;;  %s1399_s30 = smov 120   ;;  %v1400_v9 = vmov 1983009808   ;;  %s1402_s6 = smov 64  }
  0x2e   : > { %324 = vmatpush.msra.mxu0 %v301_v1  ;;  %v347_v10 = vunpack.c.l.s4 %v1400_v9  ;;  %v1401_v17 = vmov 1934713408   ;;  %s1582_s7 = sshll.u32 %s1530_s8, 5  ;;  %vm452_vm2 = vcmask 64512   ;;  %s1700_s26 = sshll.u32 %s1383_s21, 5 }
  0x2f   : > { %v371_v18 = vunpack.c.l.s4 %v1401_v17  ;;  %s1594_s13 = scalar_lea.vmem [#allocation7], %s1582_s7  ;;  %s1687_s10 = scalar_lea.vmem [#allocation10], %s1582_s7 }
  0x30   : > { %325 = vmatpush.msra.mxu0 %v300_v2  ;;  %v1546_v15 = vunpack.c.0.s8 %v347_v10  ;;  %s861_s27 = sshll.u32 %s1594_s13, 4  ;;  %s860_s11 = scalar_lea.hbm %s1803_s3, %s1700_s26  ;;  %s862_s27 = int_to_ptr.vmem [resolvable:$true] %s861_s27 }
  0x31   : > { %v1551_v23 = vunpack.c.0.s8 %v371_v18  ;;  %s1265_s21 = scalar_lea.hbm %s1803_s3, 64 }
  0x32   : > { %326 = vmatpush.msra.mxu0 %v299_v3 }
  0x33   : > { %1074 = vmatmul.msk.f32.vlgmr.msra.gmra.mxu0 %vm307_vm0, %v298_v4 }
  0xb0   : > { %v328_v6 = vpop.f32.mrf.mxu0 }
  0xb1   : > { %v329_v7 = vadd.f32 %v1184_v5, %v328_v6 }
  0xb3   : > { %338 = vrot.lane.b32.xlu1 %v329_v7, %s1396_s12  ;;  %335 = vrot.lane.b32.xlu0 %v329_v7, %s1397_s17  ;;  %v344_v14 = vrot.slane %v329_v7, 4  ;;  %s863_s12 = sshll.u32 %s860_s11, 4  ;;  %s838_s17 = scalar_lea.sflag [#allocation4], %s1530_s8  ;;  %s864_s12 = int_to_ptr.hbm [resolvable:$true] %s863_s12 }
  0xbb   : > { %457 = vrot.lane.b32.xlu1 %v329_v7, %s1398_s29  ;;  %332 = vrot.lane.b32.xlu0 %v329_v7, %s1399_s30 }
 0x125   : > { %v339_v8 = vpop.permute.xlu1 %338  ;;  %v336_v11 = vpop.permute.xlu0 %335 }
 0x126   : > { %v341_v12 = vrot.slane %v336_v11, 4  ;;  %463 = vrot.lane.b32.xlu0 %v339_v8, %s1398_s29  ;;  %461 = vrot.lane.b32.xlu2 %v336_v11, %s1398_s29  ;;  %v345_v16 = vsel %vm342_vm1, %v336_v11, %v344_v14  ;;  %v354_v20 = vrot.slane %v339_v8, 4 }
 0x127   : > { %v353_v21 = vperm.slane %v345_v16, %v1546_v15 }
 0x128   : > { %v343_v13 = vsel %vm342_vm1, %v341_v12, %v329_v7 }
 0x129   : > { %v349_v19 = vperm.slane %v343_v13, %v1546_v15  ;;  %v380_v29 = vrot.slane %v353_v21, 4 }
 0x12b   : > { %v368_v26 = vrot.slane %v349_v19, 4 }
 0x12d   : > { %v333_v22 = vpop.permute.xlu0 %332  ;;  %v458_v17 = vpop.permute.xlu1 %457 }
 0x12e   : > { %v355_v24 = vsel %vm342_vm1, %v354_v20, %v333_v22  ;;  %v356_v25 = vrot.slane %v333_v22, 4  ;;  %715 = vrot.lane.b32.xlu0 %v336_v11, %s1402_s6  ;;  %459 = vrot.lane.b32.xlu2 %v333_v22, %s1398_s29  ;;  %s1259_s29 = sshra.s32 %s864_s12, 4  ;;  %s1260_s29 = int_to_ptr.hbm [resolvable:$true] %s1259_s29 }
 0x12f   : > { %v361_v27 = vperm.slane %v355_v24, %v1546_v15  ;;  %s1261_s30 = scalar_lea.hbm %s1260_s29, 32  ;;  %p1266_p10 = scmp.lt.s32.totalorder %s1260_s29, %s1803_s3 }
 0x130   : > { %v357_v28 = vsel %vm342_vm1, %v339_v8, %v356_v25  ;;  %p1262_p1 = scmp.ne.s32.totalorder %s1260_s29, %s1261_s30  ;;  %p1267_p11 = scmp.lt.s32.totalorder %s1265_s21, %s1261_s30 }
 0x131   : > { %v365_v30 = vperm.slane %v357_v28, %v1546_v15  ;;  %v366_v31 = vrot.slane %v361_v27, 4  ;;  %v369_v32 = vsel %vm342_vm1, %v361_v27, %v368_v26 }
 0x132   : > { %v377_v33 = vperm.slane %v369_v32, %v1551_v23  ;;  %p1263_p3 = pnand %p1262_p1, %p1508_p4  ;;  %p1268_p12 = por %p1267_p11, %p1266_p10 }
 0x133   : > { %v367_v34 = vsel %vm342_vm1, %v366_v31, %v349_v19  ;;  %v378_v35 = vrot.slane %v365_v30, 4  ;;  %v381_v36 = vsel %vm342_vm1, %v365_v30, %v380_v29  ;;  %v471_v19 = vrot.slane %v458_v17, 4 }
 0x134   : > { %v373_v37 = vperm.slane %v367_v34, %v1551_v23  ;;  %v389_v38 = vperm.slane %v381_v36, %v1551_v23  ;;  %v392_v39 = vrot.slane %v377_v33, 4  ;;  %p1264_p9 = pneg %p1263_p3 }
 0x135   : > { %v379_v40 = vsel %vm342_vm1, %v378_v35, %v353_v21 }
 0x136   : > { %v385_v41 = vperm.slane %v379_v40, %v1551_v23  ;;  %v390_v42 = vrot.slane %v373_v37, 4  ;;  %v393_v43 = vsel %vm342_vm1, 0.0, %v392_v39  ;;  %v396_v44 = vrot.slane %v389_v38, 4  ;;  %717 = vrot.lane.b32.xlu0 %v339_v8, %s1402_s6  ;;  %711 = vrot.lane.b32.xlu2 %v329_v7, %s1402_s6  ;;  %p1269_p13 = pnand %p1268_p12, %p1264_p9 }
 0x137   : > { %v398_v45 = vsel %vm342_vm1, %v392_v39, %v373_v37  ;;  %v403_v46 = vrot.slane %v393_v43, 4 }
 0x138   : > { %v391_v47 = vsel %vm342_vm1, 0.0, %v390_v42  ;;  %v394_v48 = vrot.slane %v385_v41, 4  ;;  %v397_v49 = vsel %vm342_vm1, 0.0, %v396_v44  ;;  %v402_v50 = vperm.slane %v398_v45, %v1546_v15 }
 0x139   : > { %v404_v51 = vsel %vm342_vm1, %v403_v46, %v391_v47  ;;  %v409_v52 = vsel %vm342_vm1, %v396_v44, %v385_v41  ;;  %v414_v53 = vrot.slane %v397_v49, 4 }
 0x13a   : > { %v395_v54 = vsel %vm342_vm1, 0.0, %v394_v48  ;;  %v408_v55 = vperm.slane %v404_v51, %v1546_v15  ;;  %v413_v56 = vperm.slane %v409_v52, %v1546_v15  ;;  %v422_v57 = vrot.slane %v402_v50, 4 }
 0x13b   : > { %v415_v58 = vsel %vm342_vm1, %v414_v53, %v395_v54 }
 0x13c   : > { %v419_v59 = vperm.slane %v415_v58, %v1546_v15  ;;  %v420_v60 = vrot.slane %v408_v55, 4  ;;  %v423_v61 = vsel %vm342_vm1, %v408_v55, %v422_v57  ;;  %v434_v62 = vrot.slane %v413_v56, 4 }
 0x13d   : > { %v431_v63 = vperm.slane %v423_v61, %v1551_v23 }
 0x13e   : > { %v421_v0 = vsel %vm342_vm1, %v420_v60, %v402_v50  ;;  %v432_v1 = vrot.slane %v419_v59, 4  ;;  %v435_v2 = vsel %vm342_vm1, %v419_v59, %v434_v62  ;;  %713 = vrot.lane.b32.xlu2 %v333_v22, %s1402_s6 }
 0x13f   : > { %v427_v3 = vperm.slane %v421_v0, %v1551_v23  ;;  %v450_v4 = vrot.slane %v431_v63, 4  ;;  %v443_v5 = vperm.slane %v435_v2, %v1551_v23 }
 0x140   : > { %v433_v6 = vsel %vm342_vm1, %v432_v1, %v413_v56 }
 0x141   : > { %v439_v7 = vperm.slane %v433_v6, %v1551_v23  ;;  %v446_v8 = vrot.slane %v427_v3, 4  ;;  %v448_v9 = vrot.slane %v443_v5, 4  ;;  %v451_v10 = vsel %vm342_vm1, %v443_v5, %v450_v4 }
 0x142   : > { %456 = vst.msk [vmem:[%s1594_s13 + $0x18] sm:$0xff] %vm452_vm2, %v451_v10 }
 0x143   : > { %v444_v11 = vrot.slane %v439_v7, 4  ;;  %v447_v12 = vsel %vm342_vm1, %v439_v7, %v446_v8  ;;  %v449_v13 = vsel %vm342_vm1, %v448_v9, %v431_v63 }
 0x144   : > { %454 = vst.msk [vmem:[%s1594_s13 + $0x8] sm:$0xff] %vm452_vm2, %v447_v12 }
 0x145   : > { %v445_v14 = vsel %vm342_vm1, %v444_v11, %v427_v3  ;;  %455 = vst.msk [vmem:[%s1594_s13 + $0x10] sm:$0xff] %vm452_vm2, %v449_v13 }
 0x146   : > { %453 = vst.msk [vmem:[%s1594_s13] sm:$0xff] %vm452_vm2, %v445_v14 }
 0x180   : > { %v462_v16 = vpop.permute.xlu2 %461 }
 0x181   : > { %v469_v20 = vrot.slane %v462_v16, 4  ;;  %v472_v21 = vsel %vm342_vm1, %v462_v16, %v471_v19 }
 0x182   : > { %v480_v24 = vperm.slane %v472_v21, %v1546_v15 }
 0x183   : > { %v470_v22 = vsel %vm342_vm1, %v469_v20, %v458_v17 }
 0x184   : > { %v476_v26 = vperm.slane %v470_v22, %v1546_v15  ;;  %v507_v30 = vrot.slane %v480_v24, 4 }
 0x186   : > { %v495_v34 = vrot.slane %v476_v26, 4 }
 0x188   : > { %v460_v18 = vpop.permute.xlu2 %459 }
 0x189   : > { %v483_v25 = vrot.slane %v460_v18, 4 }
 0x190   : > { %v712_v31 = vpop.permute.xlu2 %711 }
 0x191   : > { %v725_v45 = vrot.slane %v712_v31, 4 }
 0x198   : > { %v464_v27 = vpop.permute.xlu0 %463  ;;  %v714_v61 = vpop.permute.xlu2 %713 }
 0x199   : > { %v481_v28 = vrot.slane %v464_v27, 4  ;;  %v484_v29 = vsel %vm342_vm1, %v464_v27, %v483_v25  ;;  %v737_v7 = vrot.slane %v714_v61, 4 }
 0x19a   : > { %v492_v32 = vperm.slane %v484_v29, %v1546_v15 }
 0x19b   : > { %v482_v33 = vsel %vm342_vm1, %v481_v28, %v460_v18 }
 0x19c   : > { %v488_v35 = vperm.slane %v482_v33, %v1546_v15  ;;  %v505_v36 = vrot.slane %v492_v32, 4  ;;  %v508_v37 = vsel %vm342_vm1, %v492_v32, %v507_v30 }
 0x19d   : > { %v516_v38 = vperm.slane %v508_v37, %v1551_v23 }
 0x19e   : > { %v493_v39 = vrot.slane %v488_v35, 4  ;;  %v496_v40 = vsel %vm342_vm1, %v488_v35, %v495_v34  ;;  %v506_v41 = vsel %vm342_vm1, %v505_v36, %v480_v24 }
 0x19f   : > { %v504_v42 = vperm.slane %v496_v40, %v1551_v23  ;;  %v512_v43 = vperm.slane %v506_v41, %v1551_v23  ;;  %v523_v44 = vrot.slane %v516_v38, 4 }
 0x1a0   : > { %v494_v46 = vsel %vm342_vm1, %v493_v39, %v476_v26  ;;  %v716_v47 = vpop.permute.xlu0 %715 }
 0x1a1   : > { %v500_v48 = vperm.slane %v494_v46, %v1551_v23  ;;  %v519_v49 = vrot.slane %v504_v42, 4  ;;  %v521_v50 = vrot.slane %v512_v43, 4  ;;  %v524_v51 = vsel %vm342_vm1, 0.0, %v523_v44 }
 0x1a2   : > { %v536_v52 = vsel %vm342_vm1, %v523_v44, %v512_v43  ;;  %v541_v53 = vrot.slane %v524_v51, 4  ;;  %v723_v54 = vrot.slane %v716_v47, 4  ;;  %v726_v55 = vsel %vm342_vm1, %v716_v47, %v725_v45 }
 0x1a3   : > { %v520_v56 = vsel %vm342_vm1, 0.0, %v519_v49  ;;  %v522_v57 = vsel %vm342_vm1, 0.0, %v521_v50  ;;  %v540_v58 = vperm.slane %v536_v52, %v1546_v15  ;;  %v734_v59 = vperm.slane %v726_v55, %v1546_v15 }
 0x1a4   : > { %v530_v60 = vrot.slane %v520_v56, 4  ;;  %v724_v62 = vsel %vm342_vm1, %v723_v54, %v712_v31  ;;  %v517_v63 = vrot.slane %v500_v48, 4  ;;  %v525_v0 = vsel %vm342_vm1, %v519_v49, %v500_v48 }
 0x1a5   : > { %v730_v1 = vperm.slane %v724_v62, %v1546_v15  ;;  %v529_v2 = vperm.slane %v525_v0, %v1546_v15  ;;  %v542_v3 = vsel %vm342_vm1, %v541_v53, %v522_v57  ;;  %v561_v6 = vrot.slane %v540_v58, 4 }
 0x1a6   : > { %v518_v4 = vsel %vm342_vm1, 0.0, %v517_v63  ;;  %v546_v5 = vperm.slane %v542_v3, %v1546_v15  ;;  %v761_v10 = vrot.slane %v734_v59, 4 }
 0x1a7   : > { %v531_v8 = vsel %vm342_vm1, %v530_v60, %v518_v4  ;;  %v549_v9 = vrot.slane %v529_v2, 4  ;;  %v749_v16 = vrot.slane %v730_v1, 4 }
 0x1a8   : > { %v718_v11 = vpop.permute.xlu0 %717  ;;  %v535_v12 = vperm.slane %v531_v8, %v1546_v15  ;;  %v562_v13 = vsel %vm342_vm1, %v546_v5, %v561_v6  ;;  %v559_v14 = vrot.slane %v546_v5, 4 }
 0x1a9   : > { %v735_v17 = vrot.slane %v718_v11, 4  ;;  %v738_v18 = vsel %vm342_vm1, %v718_v11, %v737_v7  ;;  %v570_v19 = vperm.slane %v562_v13, %v1551_v23 }
 0x1aa   : > { %v746_v20 = vperm.slane %v738_v18, %v1546_v15  ;;  %v550_v21 = vsel %vm342_vm1, %v535_v12, %v549_v9  ;;  %v547_v22 = vrot.slane %v535_v12, 4  ;;  %v560_v24 = vsel %vm342_vm1, %v559_v14, %v540_v58 }
 0x1ab   : > { %v736_v25 = vsel %vm342_vm1, %v735_v17, %v714_v61  ;;  %v558_v26 = vperm.slane %v550_v21, %v1551_v23  ;;  %v575_v27 = vrot.slane %v570_v19, 4  ;;  %v566_v28 = vperm.slane %v560_v24, %v1551_v23 }
 0x1ac   : > { %v742_v29 = vperm.slane %v736_v25, %v1546_v15  ;;  %v759_v30 = vrot.slane %v746_v20, 4  ;;  %v762_v31 = vsel %vm342_vm1, %v746_v20, %v761_v10  ;;  %v548_v32 = vsel %vm342_vm1, %v547_v22, %v529_v2 }
 0x1ad   : > { %v770_v33 = vperm.slane %v762_v31, %v1551_v23  ;;  %v576_v34 = vsel %vm342_vm1, %v575_v27, %v558_v26  ;;  %v554_v35 = vperm.slane %v548_v32, %v1551_v23  ;;  %v571_v36 = vrot.slane %v566_v28, 4 }
 0x1ae   : > { %v747_v37 = vrot.slane %v742_v29, 4  ;;  %v750_v38 = vsel %vm342_vm1, %v742_v29, %v749_v16  ;;  %v760_v39 = vsel %vm342_vm1, %v759_v30, %v734_v59  ;;  %643 = vxpose.xlu0.b32.start.end [1/1] (short) (narrow) %v576_v34, 8  ;;  %v577_v53 = vrot.slane %v558_v26, 4 }
 0x1af   : > { %v758_v40 = vperm.slane %v750_v38, %v1551_v23  ;;  %v766_v41 = vperm.slane %v760_v39, %v1551_v23  ;;  %v777_v42 = vrot.slane %v770_v33, 4  ;;  %v572_v43 = vsel %vm342_vm1, %v571_v36, %v554_v35 }
 0x1b0   : > { %v748_v44 = vsel %vm342_vm1, %v747_v37, %v730_v1  ;;  %579 = vxpose.xlu1.b32.start.end [1/1] (short) (narrow) %v572_v43, 8  ;;  %v573_v45 = vrot.slane %v554_v35, 4  ;;  %v578_v5 = vsel %vm342_vm1, %v570_v19, %v577_v53 }
 0x1b1   : > { %v754_v46 = vperm.slane %v748_v44, %v1551_v23  ;;  %v773_v47 = vrot.slane %v758_v40, 4  ;;  %v775_v48 = vrot.slane %v766_v41, 4  ;;  %v778_v49 = vsel %vm342_vm1, 0.0, %v777_v42 }
 0x1b2   : > { %v790_v50 = vsel %vm342_vm1, %v777_v42, %v766_v41  ;;  %v795_v51 = vrot.slane %v778_v49, 4  ;;  %v574_v52 = vsel %vm342_vm1, %v566_v28, %v573_v45 }
 0x1b3   : > { %v771_v54 = vrot.slane %v754_v46, 4  ;;  %v774_v55 = vsel %vm342_vm1, 0.0, %v773_v47  ;;  %v776_v56 = vsel %vm342_vm1, 0.0, %v775_v48  ;;  %v779_v57 = vsel %vm342_vm1, %v773_v47, %v754_v46  ;;  %611 = vxpose.xlu2.b32.start.end [1/1] (short) (narrow) %v574_v52, 8 }
 0x1b4   : > { %v783_v58 = vperm.slane %v779_v57, %v1546_v15  ;;  %v784_v59 = vrot.slane %v774_v55, 4  ;;  %v794_v60 = vperm.slane %v790_v50, %v1546_v15  ;;  %v796_v61 = vsel %vm342_vm1, %v795_v51, %v776_v56 }
 0x1b5   : > { %v772_v62 = vsel %vm342_vm1, 0.0, %v771_v54  ;;  %v800_v63 = vperm.slane %v796_v61, %v1546_v15 }
 0x1b6   : > { %v785_v0 = vsel %vm342_vm1, %v784_v59, %v772_v62  ;;  %v803_v1 = vrot.slane %v783_v58, 4  ;;  %v815_v2 = vrot.slane %v794_v60, 4 }
 0x1b7   : > { %v789_v3 = vperm.slane %v785_v0, %v1546_v15  ;;  %v813_v4 = vrot.slane %v800_v63, 4 }
 0x1b8   : > { %v816_v6 = vsel %vm342_vm1, %v800_v63, %v815_v2  ;;  %675 = vxpose.xlu1.b32.start.end [1/1] (short) (narrow) %v578_v5, 8 }
 0x1b9   : > { %v801_v7 = vrot.slane %v789_v3, 4  ;;  %v804_v8 = vsel %vm342_vm1, %v789_v3, %v803_v1  ;;  %v814_v9 = vsel %vm342_vm1, %v813_v4, %v794_v60  ;;  %v824_v10 = vperm.slane %v816_v6, %v1551_v23 }
 0x1ba   : > { %v812_v11 = vperm.slane %v804_v8, %v1551_v23  ;;  %v820_v12 = vperm.slane %v814_v9, %v1551_v23 }
 0x1bb   : > { %v802_v15 = vsel %vm342_vm1, %v801_v7, %v783_v58  ;;  %v829_v13 = vrot.slane %v824_v10, 4 }
 0x1bc   : > { %v808_v14 = vperm.slane %v802_v15, %v1551_v23  ;;  %v825_v16 = vrot.slane %v820_v12, 4  ;;  %v831_v17 = vrot.slane %v812_v11, 4 }
 0x1bd   : > { %v830_v18 = vsel %vm342_vm1, %v829_v13, %v812_v11 }
 0x1be   : > { %v827_v19 = vrot.slane %v808_v14, 4  ;;  %v826_v20 = vsel %vm342_vm1, %v825_v16, %v808_v14  ;;  %v832_v21 = vsel %vm342_vm1, %v824_v10, %v831_v17  ;;  %835 = vst.msk [vmem:[%s1687_s10 + $0x10] sm:$0xff] %vm452_vm2, %v830_v18 }
 0x1bf   : > { %833 = vst.msk [vmem:[%s1687_s10] sm:$0xff] %vm452_vm2, %v826_v20 }
 0x1c0   : > { %v828_v23 = vsel %vm342_vm1, %v820_v12, %v827_v19  ;;  %836 = vst.msk [vmem:[%s1687_s10 + $0x18] sm:$0xff] %vm452_vm2, %v832_v21 }
 0x1c1   : > { %834 = vst.msk [vmem:[%s1687_s10 + $0x8] sm:$0xff] %vm452_vm2, %v828_v23 }
 0x1c2   : > { %1272 = shalt.err (!%p1269_p13)
}
 0x1c3   : > { %s1403_s8 = smov 128   ;;  %s1404_s25 = smov 8  }
 0x1c4   : > { %1095 = dma.vmem_to_hbm [thread:$0]  (%p1508_p4), %s862_s27, 512, %s864_s12, %s838_s17, %s1403_s8, %s1403_s8, %s1404_s25  }
 0x1c5   : > { %s290_s0 = scalar_lea.vmem [#allocation8], %s1582_s7  ;;  %s878_s11 = scalar_lea.hbm %s1804_s4, %s1700_s26 }
 0x1c6   : > { %s896_s6 = scalar_lea.hbm %s1805_s5, %s1700_s26  ;;  %s879_s13 = sshll.u32 %s290_s0, 4  ;;  %s880_s13 = int_to_ptr.vmem [resolvable:$true] %s879_s13 }
 0x1c7   : > { %s842_s27 = sand.u32 1, %s1466_s24   ;;  %s881_s7 = sshll.u32 %s878_s11, 4  ;;  %s882_s7 = int_to_ptr.hbm [resolvable:$true] %s881_s7 }
 0x1c8   : > { %s897_s12 = sshll.u32 %s1687_s10, 4  ;;  %s1734_s17 = sshll.u32 %s896_s6, 4  ;;  %s1736_s12 = int_to_ptr.vmem [resolvable:$true] %s897_s12  ;;  %s900_s17 = int_to_ptr.hbm [resolvable:$true] %s1734_s17 }
 0x1c9   : > { %s1740_s21 = scalar_lea.sflag [#allocation9], %s842_s27  ;;  %s1287_s1 = sshra.s32 %s882_s7, 4  ;;  %s1288_s1 = int_to_ptr.hbm [resolvable:$true] %s1287_s1 }
 0x1ca   : > { %s1289_s26 = scalar_lea.hbm %s1288_s1, 32  ;;  %s1293_s28 = scalar_lea.hbm %s1804_s4, 64 }
 0x1cb   : > { %p1290_p0 = scmp.ne.s32.totalorder %s1288_s1, %s1289_s26  ;;  %p1294_p8 = scmp.lt.s32.totalorder %s1288_s1, %s1804_s4 }
 0x1cc   : > { %p1295_p1 = scmp.lt.s32.totalorder %s1293_s28, %s1289_s26 }
 0x1cd   : > { %p1291_p2 = pnand %p1290_p0, %p1508_p4 }
 0x1ce   : > { %p1296_p3 = por %p1295_p1, %p1294_p8 }
 0x1cf   : > { %p1292_p5 = pneg %p1291_p2 }
 0x1d1   : > { %p1297_p9 = pnand %p1296_p3, %p1292_p5 }
 0x24c   : > { %v627_v22 = vpop.trf.xlu2 }
 0x24d   : > { %708 = vst.msk [vmem:[%s290_s0 + $0x8] sm:$0xff] %vm452_vm2, %v627_v22 }
 0x252   : > { %v659_v24 = vpop.trf.xlu0 }
 0x253   : > { %709 = vst.msk [vmem:[%s290_s0 + $0x10] sm:$0xff] %vm452_vm2, %v659_v24 }
 0x254   : > { %v595_v25 = vpop.trf.xlu1 }
 0x255   : > { %707 = vst.msk [vmem:[%s290_s0] sm:$0xff] %vm452_vm2, %v595_v25 }
 0x25c   : > { %v691_v26 = vpop.trf.xlu1 }
 0x25d   : > { %710 = vst.msk [vmem:[%s290_s0 + $0x18] sm:$0xff] %vm452_vm2, %v691_v26 }
 0x25e   : > { %1300 = shalt.err (!%p1297_p9)
}
 0x25f   : > { %1096 = dma.vmem_to_hbm [thread:$0]  (%p1508_p4), %s880_s13, 512, %s882_s7, %s1740_s21, %s1403_s8, %s1403_s8, %s1404_s25  }
 0x260   : > { %s1315_s0 = sshra.s32 %s900_s17, 4  ;;  %s1321_s1 = scalar_lea.hbm %s1805_s5, 64  ;;  %s1316_s0 = int_to_ptr.hbm [resolvable:$true] %s1315_s0 }
 0x261   : > { %s1317_s30 = scalar_lea.hbm %s1316_s0, 32  ;;  %p1322_p13 = scmp.lt.s32.totalorder %s1316_s0, %s1805_s5 }
 0x262   : > { %p1318_p10 = scmp.ne.s32.totalorder %s1316_s0, %s1317_s30  ;;  %p1323_p0 = scmp.lt.s32.totalorder %s1321_s1, %s1317_s30 }
 0x264   : > { %p1319_p11 = pnand %p1318_p10, %p1508_p4  ;;  %p1324_p2 = por %p1323_p0, %p1322_p13 }
 0x266   : > { %p1320_p12 = pneg %p1319_p11 }
 0x268   : > { %p1325_p5 = pnand %p1324_p2, %p1320_p12 }
 0x26a   : > { %1328 = shalt.err (!%p1325_p5)
}
 0x26b   : > { %1097 = dma.vmem_to_hbm [thread:$0]  (%p1508_p4), %s1736_s12, 512, %s900_s17, %s1740_s21, %s1403_s8, %s1403_s8, %s1404_s25  }
 0x26c PF: > { %s914_s13 = sand.u32 1, %s1371_s18   ;;  %p1110_p8 = pnand %p1065_p6, %p1516_p7 }
 0x26d   : > { %s915_s7 = scalar_lea.sflag [#allocation4], %s914_s13 }
 0x26e   : > { %p1111_p1 = pneg %p1110_p8 }
 0x270   : > { %1362 = dma.done.wait (%p1111_p1), %s915_s7, 512  }
 0x271   : > { %1364 = vsyncadd (%p1111_p1), %s915_s7, 4294966784  ;;  %s1816_s14 = sadd.s32 4294967294, %s1391_s23  }
 0x272   : > { %s924_s10 = sand.u32 1, %s1816_s14  }
 0x273   : > { %s925_s28 = scalar_lea.sflag [#allocation9], %s924_s10 }
 0x274   : > { %1366 = dma.done.wait (%p1111_p1), %s925_s28, 1024  }
 0x275   : > { %1368 = vsyncadd (%p1111_p1), %s925_s28, 4294966272  ;;  %s26_s23 = sadd.s32 1, %s1391_s23   ;;  %s1817_s18 = smov %s1375_s19 }
 0x276   : > { %p23_p4 = scmp.ge.s32.totalorder %s26_s23, 4   ;;  %s1818_s19 = smov %s1379_s20 }
 0x277   : > { %s1819_s20 = smov %s1514_s15  ;;  %s1820_s21 = smov %s1387_s22 }
 0x278   : > { %s1821_s22 = smov %s1823_s9  ;;  %25 = sbr.rel (!%p23_p4) target bundleno = 12 (0xc), region = 113 }
 0x27d   :  { %941 = vsyncpa [#allocation3], 1 }
 0x27e   :  { %943 = vsyncpa [#allocation3 + $0x1], 1 }
 0x27f   :  { %944 = vsyncpa [#allocation6], 1 }
 0x280   :  { %945 = vsyncpa [#allocation4], 1 }
 0x281   :  { %947 = vsyncpa [#allocation4 + $0x1], 1 }
 0x282   :  { %948 = vsyncpa [#allocation9], 1 }
 0x283   :  { %950 = vsyncpa [#allocation9 + $0x1], 1 }

</bundles_post_ra>
